<compile_context>
chip_gen: v6e
topology: v6e:2x2x1
jax: 0.10.0
libtpu: 0.0.40
codegen_flags: <defaults>
</compile_context>

<pallas_src>
import jax
import jax.numpy as jnp
from jax import lax
from jax.experimental import pallas as pl
from jax.experimental.pallas import tpu as pltpu

_LANES = 128
_SUBLANES = 8
_DEFAULT_BLOCK_ROWS = 2048   # (2048, 128) f32 = 1 MiB / block / input; 4 MiB double-buffered
_NUM_CORE_GROUPS = 2         # leading "parallel" grid axis (sharded across TCs on v7x)


def _cdiv(a, b):
    return -(-a // b)


def _round_up(x, m):
    return _cdiv(x, m) * m


def _as_rows128(x, rows):
    """Present x as a lane-dense (rows, 128) f32 slab.

    Only a free ravel, a (<1024 element) zero pad and a reshape — no stacking,
    no full-tensor scatter.  With allow_input_fusion the pad/reshape can fuse
    into the kernel's operand fetch, avoiding an extra HBM round trip.
    """
    flat = jnp.ravel(x).astype(jnp.float32)
    pad = rows * _LANES - flat.shape[0]
    if pad:
        flat = jnp.pad(flat, (0, pad))
    return flat.reshape(rows, _LANES)


def _make_sse_kernel(block_rows, blocks_per_core, num_blocks, last_block_rows,
                     needs_mask):
    """Streaming sum-of-squared-errors kernel.

    Each grid step accumulates a (8, 128) bucketed partial SSE into its core
    group's resident output block with pure VPU adds; the final cross-lane
    reduce over 2048 buckets happens in the wrapper.
    """

    def kernel(p_ref, r_ref, out_ref):
        i = pl.program_id(1)

        @pl.when(i == 0)
        def _init():
            out_ref[...] = jnp.zeros_like(out_ref)

        d = p_ref[...] - r_ref[...]

        if needs_mask:
            # Static-count row mask: zero out (a) the undefined tail of the
            # partial last block and (b) whole surplus (clamped) blocks when
            # num_blocks does not split evenly across core groups.
            gb = pl.program_id(0) * blocks_per_core + i     # global block index
            valid_rows = jnp.where(
                gb >= num_blocks, 0,
                jnp.where(gb == num_blocks - 1, last_block_rows, block_rows))
            rid = lax.broadcasted_iota(jnp.int32, d.shape, 0)
            d = jnp.where(rid < valid_rows, d, 0.0)

        sq = d * d
        out_ref[0] += jnp.sum(sq.reshape(-1, _SUBLANES, _LANES), axis=0)

    return kernel


def _streaming_sse(pred, ref, *, max_block_rows=_DEFAULT_BLOCK_ROWS):
    """Sum of squared differences between pred and ref (any shape, same size)."""
    n = int(pred.size)

    # rows is a multiple of 8; in-array zero padding (< 1024 elems) adds 0 SSE.
    rows = max(_round_up(_cdiv(n, _LANES), _SUBLANES), _SUBLANES)

    max_block_rows = max(_SUBLANES, _round_up(int(max_block_rows), _SUBLANES))
    block_rows = min(max_block_rows, rows)
    num_blocks = _cdiv(rows, block_rows)                 # no round-up of the slab
    num_cores = min(_NUM_CORE_GROUPS, num_blocks)
    blocks_per_core = _cdiv(num_blocks, num_cores)
    last_block_rows = rows - (num_blocks - 1) * block_rows
    needs_mask = (num_cores * blocks_per_core * block_rows) != rows

    p2 = _as_rows128(pred, rows)
    r2 = _as_rows128(ref, rows)

    kernel = _make_sse_kernel(block_rows, blocks_per_core, num_blocks,
                              last_block_rows, needs_mask)

    def in_map(c, i):
        # Clamp so surplus steps (odd num_blocks split over 2 core groups)
        # re-fetch an in-bounds block; their contribution is masked to zero.
        return (jnp.minimum(c * blocks_per_core + i, num_blocks - 1), 0)

    partials = pl.pallas_call(
        kernel,
        out_shape=jax.ShapeDtypeStruct((num_cores, _SUBLANES, _LANES),
                                       jnp.float32),
        grid=(num_cores, blocks_per_core),
        in_specs=[
            pl.BlockSpec((block_rows, _LANES), in_map),
            pl.BlockSpec((block_rows, _LANES), in_map),
        ],
        # Output block is constant along the (inner, "arbitrary") reduction axis
        # -> resident accumulator, one per core group; written back once.
        out_specs=pl.BlockSpec((1, _SUBLANES, _LANES), lambda c, i: (c, 0, 0)),
        compiler_params=pltpu.CompilerParams(
            dimension_semantics=("parallel", "arbitrary"),
            allow_input_fusion=[True, True],
        ),
        cost_estimate=pl.CostEstimate(
            flops=3 * n,
            transcendentals=0,
            bytes_accessed=8 * n + num_cores * _SUBLANES * _LANES * 4,
        ),
    )(p2, r2)

    return jnp.sum(partials)


def total_loss(predictions, references, weights, *,
               max_block_rows=_DEFAULT_BLOCK_ROWS):
    """
    Pallas equivalent of TotalLoss.forward.

    predictions / references : dicts with keys "energy" [S] and "forces" [N, 3]
    weights                  : dict of float weights per component
    Returns (total_loss, components) mirroring TotalLossResult, where
    components[name] = (loss_value, weighted_loss_value).
    """
    w_e = float(weights.get("energy", 1.0))
    w_f = float(weights.get("forces", 1.0))

    # Energy MSE: a handful of per-structure f32 scalars -> plain JAX (per the
    # performance review; a DMA stream / kernel step for it is pure overhead).
    e_pred = jnp.ravel(predictions["energy"]).astype(jnp.float32)
    e_ref = jnp.ravel(references["energy"]).astype(jnp.float32)
    n_e = int(e_pred.size)
    e_loss = jnp.mean((e_pred - e_ref) ** 2) if n_e > 0 else jnp.float32(0.0)

    # Force MSE: the heavy streaming reduction, done in the Pallas kernel.
    n_f = int(predictions["forces"].size)
    if n_f > 0:
        f_sse = _streaming_sse(predictions["forces"], references["forces"],
                               max_block_rows=max_block_rows)
        f_loss = f_sse * (1.0 / n_f)
    else:
        f_loss = jnp.float32(0.0)

    # TotalLoss accumulation: sum_i w_i * L_i
    total = w_e * e_loss + w_f * f_loss
    components = {
        "energy": (e_loss, e_loss * w_e),
        "forces": (f_loss, f_loss * w_f),
    }
    return total, components


if __name__ == "__main__":
    key = jax.random.PRNGKey(0)
    weights = {"energy": 1.0, "forces": 3.0}

    # (small, single block) ; (medium, single large block) ; (larger case
    # exercising the multi-block grid, the 2-way core split, the clamped
    # surplus block and the in-kernel partial-block row mask)
    cases = [(2, 8), (16, 30000), (7, 220000)]

    for n_structures, n_atoms in cases:
        key, k1, k2, k3, k4 = jax.random.split(key, 5)
        predictions = {
            "energy": jax.random.normal(k1, (n_structures,), jnp.float32),
            "forces": jax.random.normal(k2, (n_atoms, 3), jnp.float32),
        }
        refs = {
            "energy": jax.random.normal(k3, (n_structures,), jnp.float32),
            "forces": jax.random.normal(k4, (n_atoms, 3), jnp.float32),
        }

        total, comps = total_loss(predictions, refs, weights)
        jax.block_until_ready(total)

        # pure-JAX reference (TotalLoss.forward semantics with MSE sub-losses)
        e_ref = jnp.mean((predictions["energy"] - refs["energy"]) ** 2)
        f_ref = jnp.mean((predictions["forces"] - refs["forces"]) ** 2)
        tot_ref = weights["energy"] * e_ref + weights["forces"] * f_ref

        assert jnp.allclose(comps["energy"][0], e_ref, rtol=1e-4, atol=1e-6)
        assert jnp.allclose(comps["forces"][0], f_ref, rtol=1e-4, atol=1e-6)
        assert jnp.allclose(comps["energy"][1], e_ref * weights["energy"],
                            rtol=1e-4, atol=1e-6)
        assert jnp.allclose(comps["forces"][1], f_ref * weights["forces"],
                            rtol=1e-4, atol=1e-6)
        assert jnp.allclose(total, tot_ref, rtol=1e-4, atol=1e-6)

    print("KERNEL_OK")
</pallas_src>

<mosaic_0001>
module attributes {stable_mosaic.version = 11 : i64} {
  func.func @kernel(%arg0: i32, %arg1: i32, %arg2: memref<8x128xf32, #tpu.memory_space<vmem>>, %arg3: memref<8x128xf32, #tpu.memory_space<vmem>>, %arg4: memref<1x8x128xf32, #tpu.memory_space<vmem>>) attributes {dimension_semantics = [#tpu.dimension_semantics<parallel>, #tpu.dimension_semantics<arbitrary>], iteration_bounds = array<i64: 1, 1>, scalar_prefetch = 0 : i64, scratch_operands = 0 : i64, tpu.core_type = #tpu.core_type<tc>, window_params = [{transform_indices = @transform_0, window_bounds = array<i64: 8, 128>}, {transform_indices = @transform_1, window_bounds = array<i64: 8, 128>}, {transform_indices = @transform_2, window_bounds = array<i64: 1, 8, 128>}]} {
    %c0_i32 = arith.constant 0 : i32
    %0 = arith.cmpi eq, %arg1, %c0_i32 : i32
    %1 = arith.extui %0 : i1 to i32
    %c0_i32_0 = arith.constant 0 : i32
    %2 = arith.cmpi ne, %1, %c0_i32_0 : i32
    scf.if %2 {
      %cst_10 = arith.constant 0.000000e+00 : f32
      %15 = vector.broadcast %cst_10 : f32 to vector<1x8x128xf32>
      %c0_11 = arith.constant 0 : index
      %c0_12 = arith.constant 0 : index
      %c0_13 = arith.constant 0 : index
      %16 = vector.load %arg4[%c0_11, %c0_12, %c0_13] : memref<1x8x128xf32, #tpu.memory_space<vmem>>, vector<1x8x128xf32>
      tpu.vector_store %arg4[%c0_11, %c0_12, %c0_13], %15 {strides = array<i32>} : memref<1x8x128xf32, #tpu.memory_space<vmem>>, vector<1x8x128xf32>,
    } else {
    }
    %c0 = arith.constant 0 : index
    %c0_1 = arith.constant 0 : index
    %3 = vector.load %arg2[%c0, %c0_1] : memref<8x128xf32, #tpu.memory_space<vmem>>, vector<8x128xf32>
    %c0_2 = arith.constant 0 : index
    %c0_3 = arith.constant 0 : index
    %4 = vector.load %arg3[%c0_2, %c0_3] : memref<8x128xf32, #tpu.memory_space<vmem>>, vector<8x128xf32>
    %5 = arith.subf %3, %4 : vector<8x128xf32>
    %6 = arith.mulf %5, %5 : vector<8x128xf32>
    %c0_4 = arith.constant 0 : index
    %c0_5 = arith.constant 0 : index
    %c0_6 = arith.constant 0 : index
    %7 = vector.load %arg4[%c0_4, %c0_5, %c0_6] : memref<1x8x128xf32, #tpu.memory_space<vmem>>, vector<1x8x128xf32>
    %8 = vector.shape_cast %7 : vector<1x8x128xf32> to vector<8x128xf32>
    %9 = vector.shape_cast %6 : vector<8x128xf32> to vector<1x8x128xf32>
    %cst = arith.constant dense<0.000000e+00> : vector<8x128xf32>
    %10 = vector.multi_reduction <add>, %9, %cst [0] : vector<1x8x128xf32> to vector<8x128xf32>
    %11 = arith.addf %8, %10 : vector<8x128xf32>
    %c0_7 = arith.constant 0 : index
    %c0_8 = arith.constant 0 : index
    %c0_9 = arith.constant 0 : index
    %12 = vector.load %arg4[%c0_7, %c0_8, %c0_9] : memref<1x8x128xf32, #tpu.memory_space<vmem>>, vector<1x8x128xf32>
    %13 = vector.shape_cast %12 : vector<1x8x128xf32> to vector<8x128xf32>
    %14 = vector.shape_cast %11 : vector<8x128xf32> to vector<1x8x128xf32>
    tpu.vector_store %arg4[%c0_7, %c0_8, %c0_9], %14 {strides = array<i32>} : memref<1x8x128xf32, #tpu.memory_space<vmem>>, vector<1x8x128xf32>,
    return
  }
  func.func @transform_0(%arg0: i32, %arg1: i32) -> (i32, i32) {
    %c1_i32 = arith.constant 1 : i32
    %0 = arith.muli %arg0, %c1_i32 : i32
    %1 = arith.addi %0, %arg1 : i32
    %c0_i32 = arith.constant 0 : i32
    %2 = arith.minsi %1, %c0_i32 : i32
    %c0_i32_0 = arith.constant 0 : i32
    %c0_i32_1 = arith.constant 0 : i32
    return %2, %c0_i32_0 : i32, i32
  }
  func.func @transform_1(%arg0: i32, %arg1: i32) -> (i32, i32) {
    %c1_i32 = arith.constant 1 : i32
    %0 = arith.muli %arg0, %c1_i32 : i32
    %1 = arith.addi %0, %arg1 : i32
    %c0_i32 = arith.constant 0 : i32
    %2 = arith.minsi %1, %c0_i32 : i32
    %c0_i32_0 = arith.constant 0 : i32
    %c0_i32_1 = arith.constant 0 : i32
    return %2, %c0_i32_0 : i32, i32
  }
  func.func @transform_2(%arg0: i32, %arg1: i32) -> (i32, i32, i32) {
    %c0_i32 = arith.constant 0 : i32
    %c0_i32_0 = arith.constant 0 : i32
    %c0_i32_1 = arith.constant 0 : i32
    return %arg0, %c0_i32, %c0_i32_0 : i32, i32, i32
  }
}

</mosaic_0001>

<bundles_post_ra>
// kernel: tpu_custom_call.1
= control target key start
LH: loop header
LB: loop body
LE: loop exit
PB: predicated region body
PF: predicated region fallthrough
CT: control target
= control target key end

     0   :  { %7 = vsyncpa [#allocation3], 0  ;;  %s182_s0 = inlined_call_operand.hbm [shape: f32[8,128], index: 0, kind: input, shape index: {}]   ;;  %s183_s1 = inlined_call_operand.hbm [shape: f32[8,128], index: 1, kind: input, shape index: {}]   ;;  %s184_s2 = inlined_call_operand.hbm [shape: f32[1,8,128], index: 2, kind: output, shape index: {}]  }
   0x1   :  { %8 = vsyncpa [#allocation6], 0 }
   0x2   :  { %9 = vsyncpa [#allocation4], 0  ;;  %s155_s9 = smov [#allocation2]   ;;  %s156_s11 = smov [#allocation5]  }
   0x3   :  { %s21_s10 = sshll.u32 %s155_s9, 4  ;;  %s36_s12 = sshll.u32 %s156_s11, 4  ;;  %s22_s10 = int_to_ptr.vmem [resolvable:$true] %s21_s10  ;;  %s37_s12 = int_to_ptr.vmem [resolvable:$true] %s36_s12 }
   0x4   :  { %s97_s13 = scalar_lea.vmem %s22_s10, 128  ;;  %p102_p1 = scmp.lt.s32.totalorder %s22_s10, %s22_s10 }
   0x5   :  { %p98_p0 = scmp.ne.s32.totalorder %s22_s10, %s97_s13  ;;  %p103_p2 = scmp.lt.s32.totalorder %s97_s13, %s97_s13 }
   0x7   :  { %p104_p3 = por %p103_p2, %p102_p1 }
   0x9   :  { %p105_p4 = pnand %p104_p3, %p98_p0 }
   0xb   :  { %108 = shalt.err (!%p105_p4)
}
   0xc   :  { %24 = dma.hbm_to_vmem [thread:$0]  %s182_s0, 128, %s22_s10, [#allocation3]  }
   0xd   :  { %s117_s16 = scalar_lea.vmem %s37_s12, 128  ;;  %p122_p6 = scmp.lt.s32.totalorder %s37_s12, %s37_s12 }
   0xe   :  { %p118_p5 = scmp.ne.s32.totalorder %s37_s12, %s117_s16  ;;  %p123_p7 = scmp.lt.s32.totalorder %s117_s16, %s117_s16 }
  0x10   :  { %p124_p8 = por %p123_p7, %p122_p6 }
  0x12   :  { %p125_p9 = pnand %p124_p8, %p118_p5 }
  0x14   :  { %128 = shalt.err (!%p125_p9)
}
  0x15   :  { %39 = dma.hbm_to_vmem [thread:$0]  %s183_s1, 128, %s37_s12, [#allocation6]  }
  0x16   :  { %149 = dma.done.wait [#allocation3], 128  }
  0x17   :  { %150 = vsyncadd [#allocation3], 4294967168 }
  0x18   :  { %151 = dma.done.wait [#allocation6], 128  }
  0x19   :  { %152 = vsyncadd [#allocation6], 4294967168  ;;  %v57_v0 = vld [vmem:[#allocation2] sm:$0xff]  ;;  %v58_v1 = vld [vmem:[#allocation5] sm:$0xff]  ;;  %s157_s19 = smov [#allocation7]  }
  0x1a   :  { %v59_v2 = vsub.f32 %v57_v0, %v58_v1  ;;  %s71_s0 = sshll.u32 %s157_s19, 4  ;;  %s72_s0 = int_to_ptr.vmem [resolvable:$true] %s71_s0 }
  0x1b   :  { %s129_s20 = scalar_lea.vmem %s72_s0, 128  ;;  %p134_p11 = scmp.lt.s32.totalorder %s72_s0, %s72_s0 }
  0x1c   :  { %v60_v3 = vmul.f32 %v59_v2, %v59_v2  ;;  %p130_p10 = scmp.ne.s32.totalorder %s72_s0, %s129_s20  ;;  %p135_p12 = scmp.lt.s32.totalorder %s129_s20, %s129_s20 }
  0x1e   :  { %64 = vst [vmem:[#allocation7] sm:$0xff] %v60_v3  ;;  %p136_p13 = por %p135_p12, %p134_p11 }
  0x20   :  { %p137_p0 = pnand %p136_p13, %p130_p10 }
  0x22   :  { %140 = shalt.err (!%p137_p0)
}
  0x23   :  { %74 = dma.vmem_to_hbm [thread:$0]  %s72_s0, 128, %s184_s2, [#allocation4]  }
  0x24   :  { %153 = dma.done.wait [#allocation4], 128  }
  0x25   :  { %154 = vsyncadd [#allocation4], 4294967168 }
  0x26   :  { %78 = vsyncpa [#allocation3], 1 }
  0x27   :  { %79 = vsyncpa [#allocation6], 1 }
  0x28   :  { %80 = vsyncpa [#allocation4], 1 }

</bundles_post_ra>
